<compile_context>
chip_gen: v7x
topology: tpu7x:2x2x1
jax: 0.10.0
libtpu: 0.0.40
codegen_flags: <defaults>
</compile_context>

<pallas_src>
import functools

import jax
import jax.numpy as jnp
from jax import lax
from jax.experimental import pallas as pl
from jax.experimental.pallas import tpu as pltpu


def _round_up(x, m):
    return ((x + m - 1) // m) * m


def _rnn_kernel(sched_ref, pre_ref, len_ref, whh_ref, out_ref, h_scratch, *, tc):
    """One (batch_tile, time_chunk) grid step of the recurrence.

    sched_ref : SMEM (2,) int32  = [max_len, last_live_chunk]   (scalar prefetch)
    pre_ref   : VMEM (tc, BT, H) f32   precomputed x_t @ W_ih^T + b  for this chunk
    len_ref   : VMEM (BT, 1)    int32  per-row sequence lengths
    whh_ref   : VMEM (H, H)     bf16   recurrent weights (zero-padded)
    out_ref   : VMEM (BT, H)    f32    final hidden state
    h_scratch : VMEM (BT, H)    f32    carried hidden state (persists across chunks)
    """
    c = pl.program_id(1)

    @pl.when(c == 0)
    def _():
        h_scratch[...] = jnp.zeros_like(h_scratch)

    chunk_start = c * tc

    # Skip chunks that start past the longest sequence (their DMA is also skipped
    # because the clamped index_map re-uses the last live block index).
    @pl.when(chunk_start < sched_ref[0])
    def _():
        lens = len_ref[...]                      # (BT, 1) int32
        w_hh = whh_ref[...]                      # (H, H)  bf16

        def step(i, h):
            t = chunk_start + i
            pre_t = pre_ref[i]                   # (BT, H) f32, already x@W_ih^T + b
            h_new = jnp.tanh(
                pre_t
                + jnp.dot(h.astype(w_hh.dtype), w_hh,
                          preferred_element_type=jnp.float32))
            # packed-sequence semantics: freeze rows whose sequence has ended
            return jnp.where(t < lens, h_new, h)

        h_scratch[...] = lax.fori_loop(0, tc, step, h_scratch[...], unroll=True)

    @pl.when(c == pl.num_programs(1) - 1)
    def _():
        out_ref[...] = h_scratch[...]


def simple_rnn_forward(text, lengths, params, *, time_chunk=32, batch_tile=256):
    """text: (B, T) int32 token ids, lengths: (B,) int32. Returns (B, O) logits."""
    emb = params["embedding"]                    # (V, E)
    w_ih_t = params["w_ih_t"]                    # (E, H)
    w_hh_t = params["w_hh_t"]                    # (H, H)
    b_sum = params["b_sum"]                      # (1, H)  b_ih + b_hh
    w_fc_t = params["w_fc_t"]                    # (H, O)
    b_fc = params["b_fc"]                        # (1, O)

    B, T = text.shape
    H = w_hh_t.shape[0]

    # --- Hoisted input projection (plain-JAX glue): fold W_ih + biases into the
    # embedding table, so the gather already yields the per-step pre-activation.
    emb_proj = emb @ w_ih_t + b_sum              # (V, H)  one large MXU matmul
    pre = emb_proj[text.astype(jnp.int32)]       # (B, T, H)

    # --- Pad to vreg/MXU-friendly shapes: batch -> sublane(8), hidden -> lane(128).
    bt = _round_up(min(batch_tile, _round_up(B, 8)), 8)
    B_pad = _round_up(_round_up(B, 8), bt)
    H_pad = _round_up(H, 128)
    tc = min(time_chunk, T)
    T_pad = _round_up(T, tc)
    n_btiles = B_pad // bt
    n_chunks = T_pad // tc

    pre_tm = jnp.transpose(pre, (1, 0, 2)).astype(jnp.float32)     # (T, B, H)
    pre_p = jnp.zeros((T_pad, B_pad, H_pad), jnp.float32)
    pre_p = pre_p.at[:T, :B, :H].set(pre_tm)

    # Zero-padded W_hh, cast to bf16 for the MXU (accumulation stays f32).
    whh_p = jnp.zeros((H_pad, H_pad), jnp.float32).at[:H, :H].set(w_hh_t)
    whh_p = whh_p.astype(jnp.bfloat16)

    len_i32 = lengths.astype(jnp.int32)
    len_p = jnp.zeros((B_pad, 1), jnp.int32).at[:B, 0].set(len_i32)

    # Scalar-prefetch schedule: [max_len, last_live_chunk_index].
    max_len = jnp.max(len_i32)
    last_live = jnp.maximum((max_len + tc - 1) // tc - 1, 0)
    sched = jnp.stack([max_len, last_live]).astype(jnp.int32)      # (2,)

    def pre_map(b, c, sched_ref):
        # Dead trailing chunks re-use the last live block index -> no new DMA.
        return (jnp.minimum(c, sched_ref[1]), b, 0)

    grid_spec = pltpu.PrefetchScalarGridSpec(
        num_scalar_prefetch=1,
        grid=(n_btiles, n_chunks),
        in_specs=[
            pl.BlockSpec((tc, bt, H_pad), pre_map),                 # pre-activations
            pl.BlockSpec((bt, 1), lambda b, c, s: (b, 0)),          # lengths
            pl.BlockSpec((H_pad, H_pad), lambda b, c, s: (0, 0)),   # W_hh^T (bf16)
        ],
        out_specs=pl.BlockSpec((bt, H_pad), lambda b, c, s: (b, 0)),
        scratch_shapes=[pltpu.VMEM((bt, H_pad), jnp.float32)],
    )

    # Explicit VMEM budget (v7x has only 64 MiB physical / 32 MiB default scoped).
    vmem_bytes = (2 * tc * bt * H_pad * 4        # double-buffered pre chunk (f32)
                  + H_pad * H_pad * 2            # W_hh (bf16)
                  + 3 * bt * H_pad * 4           # out block + h scratch
                  + 2 * bt * 128 * 4)            # lengths tile
    vmem_limit = int(min(max(2 * vmem_bytes, 4 << 20), 48 << 20))

    h_last_pad = pl.pallas_call(
        functools.partial(_rnn_kernel, tc=tc),
        out_shape=jax.ShapeDtypeStruct((B_pad, H_pad), jnp.float32),
        grid_spec=grid_spec,
        compiler_params=pltpu.CompilerParams(
            dimension_semantics=("parallel", "arbitrary"),
            vmem_limit_bytes=vmem_limit),
    )(sched, pre_p, len_p, whh_p)

    # Tiny FC kept in plain JAX so the kernel output stays lane-dense (B_pad, H_pad).
    h_last = h_last_pad[:B, :H]
    return h_last @ w_fc_t + b_fc


def _reference_forward(text, lengths, params):
    """Pure-JAX reference with identical math (folded projection, bf16 W_hh)."""
    emb_proj = params["embedding"] @ params["w_ih_t"] + params["b_sum"]
    pre = emb_proj[text.astype(jnp.int32)]                         # (B, T, H)
    w_hh_bf16 = params["w_hh_t"].astype(jnp.bfloat16)
    B, T, H = pre.shape

    def step(h, inp):
        t, p_t = inp
        h_new = jnp.tanh(
            p_t + jnp.dot(h.astype(jnp.bfloat16), w_hh_bf16,
                          preferred_element_type=jnp.float32))
        mask = (t < lengths)[:, None]
        return jnp.where(mask, h_new, h), None

    h0 = jnp.zeros((B, H), jnp.float32)
    xs = (jnp.arange(T), jnp.transpose(pre, (1, 0, 2)))
    h_last, _ = lax.scan(step, h0, xs)
    return h_last @ params["w_fc_t"] + params["b_fc"]


def init_params(key, vocab_size, embed_dim, hidden_dim, output_dim, pad_idx):
    k_emb, k_wih, k_whh, k_bih, k_bhh, k_wfc, k_bfc = jax.random.split(key, 7)
    bound_rnn = 1.0 / jnp.sqrt(hidden_dim)
    bound_fc = 1.0 / jnp.sqrt(hidden_dim)

    emb = jax.random.normal(k_emb, (vocab_size, embed_dim), jnp.float32)
    emb = emb.at[pad_idx].set(0.0)               # padding_idx row zero

    w_ih = jax.random.uniform(k_wih, (hidden_dim, embed_dim), jnp.float32,
                              -bound_rnn, bound_rnn)
    w_hh = jax.random.uniform(k_whh, (hidden_dim, hidden_dim), jnp.float32,
                              -bound_rnn, bound_rnn)
    b_ih = jax.random.uniform(k_bih, (hidden_dim,), jnp.float32,
                              -bound_rnn, bound_rnn)
    b_hh = jax.random.uniform(k_bhh, (hidden_dim,), jnp.float32,
                              -bound_rnn, bound_rnn)
    w_fc = jax.random.uniform(k_wfc, (output_dim, hidden_dim), jnp.float32,
                              -bound_fc, bound_fc)
    b_fc = jax.random.uniform(k_bfc, (output_dim,), jnp.float32,
                              -bound_fc, bound_fc)

    return {
        "embedding": emb,
        "w_ih_t": w_ih.T,                        # (E, H)
        "w_hh_t": w_hh.T,                        # (H, H)
        "b_sum": (b_ih + b_hh).reshape(1, hidden_dim),
        "w_fc_t": w_fc.T,                        # (H, O)
        "b_fc": b_fc.reshape(1, output_dim),
    }


if __name__ == "__main__":
    vocab_size, embed_dim, hidden_dim, output_dim, pad_idx = 20, 32, 32, 4, 0
    B, T = 2, 8

    key = jax.random.PRNGKey(0)
    k_params, k_text = jax.random.split(key)
    params = init_params(k_params, vocab_size, embed_dim, hidden_dim,
                         output_dim, pad_idx)

    text = jax.random.randint(k_text, (B, T), 1, vocab_size, jnp.int32)
    lengths = jnp.array([8, 5], jnp.int32)
    # pad positions beyond each length with pad_idx (as a real padded batch would be)
    pos = jnp.arange(T)[None, :]
    text = jnp.where(pos < lengths[:, None], text, pad_idx)

    out = simple_rnn_forward(text, lengths, params)
    out = jax.block_until_ready(out)

    ref = _reference_forward(text, lengths, params)
    assert out.shape == (B, output_dim)
    assert jnp.allclose(out, ref, atol=1e-5, rtol=1e-5)

    print("KERNEL_OK")
</pallas_src>

<mosaic_0001>
module attributes {stable_mosaic.version = 11 : i64} {
  func.func @_rnn_kernel(%arg0: i32, %arg1: i32, %arg2: memref<2xi32, #tpu.memory_space<smem>>, %arg3: memref<8x8x128xf32, #tpu.memory_space<vmem>>, %arg4: memref<8x1xi32, #tpu.memory_space<vmem>>, %arg5: memref<128x128xbf16, #tpu.memory_space<vmem>>, %arg6: memref<8x128xf32, #tpu.memory_space<vmem>>, %arg7: memref<8x128xf32, #tpu.memory_space<vmem>>) attributes {dimension_semantics = [#tpu.dimension_semantics<parallel>, #tpu.dimension_semantics<arbitrary>], iteration_bounds = array<i64: 1, 1>, scalar_prefetch = 1 : i64, scratch_operands = 1 : i64, tpu.core_type = #tpu.core_type<tc>, window_params = [{transform_indices = @transform_0, window_bounds = array<i64: 8, 8, 128>}, {transform_indices = @transform_1, window_bounds = array<i64: 8, 1>}, {pipeline_mode = #tpu.pipeline_mode<synchronous>, transform_indices = @transform_2, window_bounds = array<i64: 128, 128>}, {transform_indices = @transform_3, window_bounds = array<i64: 8, 128>}]} {
    %c0_i32 = arith.constant 0 : i32
    %0 = arith.cmpi eq, %arg1, %c0_i32 : i32
    %1 = arith.extui %0 : i1 to i32
    %c0_i32_0 = arith.constant 0 : i32
    %2 = arith.cmpi ne, %1, %c0_i32_0 : i32
    scf.if %2 {
      %cst = arith.constant 0.000000e+00 : f32
      %11 = vector.broadcast %cst : f32 to vector<8x128xf32>
      %c0_4 = arith.constant 0 : index
      %c0_5 = arith.constant 0 : index
      %12 = vector.load %arg7[%c0_4, %c0_5] : memref<8x128xf32, #tpu.memory_space<vmem>>, vector<8x128xf32>
      tpu.vector_store %arg7[%c0_4, %c0_5], %11 {strides = array<i32>} : memref<8x128xf32, #tpu.memory_space<vmem>>, vector<8x128xf32>,
    } else {
    }
    %c8_i32 = arith.constant 8 : i32
    %3 = arith.muli %arg1, %c8_i32 : i32
    %c0 = arith.constant 0 : index
    %4 = memref.load %arg2[%c0] : memref<2xi32, #tpu.memory_space<smem>>
    %5 = arith.cmpi slt, %3, %4 : i32
    %6 = arith.extui %5 : i1 to i32
    %c0_i32_1 = arith.constant 0 : i32
    %7 = arith.cmpi ne, %6, %c0_i32_1 : i32
    scf.if %7 {
      %c0_4 = arith.constant 0 : index
      %c0_5 = arith.constant 0 : index
      %11 = vector.load %arg4[%c0_4, %c0_5] : memref<8x1xi32, #tpu.memory_space<vmem>>, vector<8x1xi32>
      %c0_6 = arith.constant 0 : index
      %c0_7 = arith.constant 0 : index
      %12 = vector.load %arg5[%c0_6, %c0_7] : memref<128x128xbf16, #tpu.memory_space<vmem>>, vector<128x128xbf16>
      %c0_8 = arith.constant 0 : index
      %c0_9 = arith.constant 0 : index
      %13 = vector.load %arg7[%c0_8, %c0_9] : memref<8x128xf32, #tpu.memory_space<vmem>>, vector<8x128xf32>
      %c0_i32_10 = arith.constant 0 : i32
      %14 = arith.addi %3, %c0_i32_10 : i32
      %15 = arith.index_cast %c0_i32_10 : i32 to index
      %c0_11 = arith.constant 0 : index
      %c0_12 = arith.constant 0 : index
      %16 = vector.load %arg3[%15, %c0_11, %c0_12] : memref<8x8x128xf32, #tpu.memory_space<vmem>>, vector<1x8x128xf32>
      %17 = vector.shape_cast %16 : vector<1x8x128xf32> to vector<8x128xf32>
      %18 = arith.truncf %13 : vector<8x128xf32> to vector<8x128xbf16>
      %cst = arith.constant dense<0.000000e+00> : vector<8x128xf32>
      %19 = tpu.matmul %18, %12, %cst {dimension_numbers = #tpu.dot_dimension_numbers<[1], [0], [0], [1], [0, 0, 1, 1], [], []>} : vector<8x128xbf16>, vector<128x128xbf16>, vector<8x128xf32> -> vector<8x128xf32>
      %20 = arith.addf %17, %19 : vector<8x128xf32>
      %21 = math.tanh %20 : vector<8x128xf32>
      %22 = vector.broadcast %14 : i32 to vector<8x1xi32>
      %23 = arith.cmpi slt, %22, %11 : vector<8x1xi32>
      %24 = vector.shape_cast %23 : vector<8x1xi1> to vector<8x1xi1>
      %25 = vector.broadcast %24 : vector<8x1xi1> to vector<8x128xi1>
      %26 = arith.select %25, %21, %13 : vector<8x128xi1>, vector<8x128xf32>
      %c1_i32 = arith.constant 1 : i32
      %27 = arith.addi %3, %c1_i32 : i32
      %28 = arith.index_cast %c1_i32 : i32 to index
      %c0_13 = arith.constant 0 : index
      %c0_14 = arith.constant 0 : index
      %29 = vector.load %arg3[%28, %c0_13, %c0_14] : memref<8x8x128xf32, #tpu.memory_space<vmem>>, vector<1x8x128xf32>
      %30 = vector.shape_cast %29 : vector<1x8x128xf32> to vector<8x128xf32>
      %31 = arith.truncf %26 : vector<8x128xf32> to vector<8x128xbf16>
      %cst_15 = arith.constant dense<0.000000e+00> : vector<8x128xf32>
      %32 = tpu.matmul %31, %12, %cst_15 {dimension_numbers = #tpu.dot_dimension_numbers<[1], [0], [0], [1], [0, 0, 1, 1], [], []>} : vector<8x128xbf16>, vector<128x128xbf16>, vector<8x128xf32> -> vector<8x128xf32>
      %33 = arith.addf %30, %32 : vector<8x128xf32>
      %34 = math.tanh %33 : vector<8x128xf32>
      %35 = vector.broadcast %27 : i32 to vector<8x1xi32>
      %36 = arith.cmpi slt, %35, %11 : vector<8x1xi32>
      %37 = vector.shape_cast %36 : vector<8x1xi1> to vector<8x1xi1>
      %38 = vector.broadcast %37 : vector<8x1xi1> to vector<8x128xi1>
      %39 = arith.select %38, %34, %26 : vector<8x128xi1>, vector<8x128xf32>
      %c2_i32 = arith.constant 2 : i32
      %40 = arith.addi %3, %c2_i32 : i32
      %41 = arith.index_cast %c2_i32 : i32 to index
      %c0_16 = arith.constant 0 : index
      %c0_17 = arith.constant 0 : index
      %42 = vector.load %arg3[%41, %c0_16, %c0_17] : memref<8x8x128xf32, #tpu.memory_space<vmem>>, vector<1x8x128xf32>
      %43 = vector.shape_cast %42 : vector<1x8x128xf32> to vector<8x128xf32>
      %44 = arith.truncf %39 : vector<8x128xf32> to vector<8x128xbf16>
      %cst_18 = arith.constant dense<0.000000e+00> : vector<8x128xf32>
      %45 = tpu.matmul %44, %12, %cst_18 {dimension_numbers = #tpu.dot_dimension_numbers<[1], [0], [0], [1], [0, 0, 1, 1], [], []>} : vector<8x128xbf16>, vector<128x128xbf16>, vector<8x128xf32> -> vector<8x128xf32>
      %46 = arith.addf %43, %45 : vector<8x128xf32>
      %47 = math.tanh %46 : vector<8x128xf32>
      %48 = vector.broadcast %40 : i32 to vector<8x1xi32>
      %49 = arith.cmpi slt, %48, %11 : vector<8x1xi32>
      %50 = vector.shape_cast %49 : vector<8x1xi1> to vector<8x1xi1>
      %51 = vector.broadcast %50 : vector<8x1xi1> to vector<8x128xi1>
      %52 = arith.select %51, %47, %39 : vector<8x128xi1>, vector<8x128xf32>
      %c3_i32 = arith.constant 3 : i32
      %53 = arith.addi %3, %c3_i32 : i32
      %54 = arith.index_cast %c3_i32 : i32 to index
      %c0_19 = arith.constant 0 : index
      %c0_20 = arith.constant 0 : index
      %55 = vector.load %arg3[%54, %c0_19, %c0_20] : memref<8x8x128xf32, #tpu.memory_space<vmem>>, vector<1x8x128xf32>
      %56 = vector.shape_cast %55 : vector<1x8x128xf32> to vector<8x128xf32>
      %57 = arith.truncf %52 : vector<8x128xf32> to vector<8x128xbf16>
      %cst_21 = arith.constant dense<0.000000e+00> : vector<8x128xf32>
      %58 = tpu.matmul %57, %12, %cst_21 {dimension_numbers = #tpu.dot_dimension_numbers<[1], [0], [0], [1], [0, 0, 1, 1], [], []>} : vector<8x128xbf16>, vector<128x128xbf16>, vector<8x128xf32> -> vector<8x128xf32>
      %59 = arith.addf %56, %58 : vector<8x128xf32>
      %60 = math.tanh %59 : vector<8x128xf32>
      %61 = vector.broadcast %53 : i32 to vector<8x1xi32>
      %62 = arith.cmpi slt, %61, %11 : vector<8x1xi32>
      %63 = vector.shape_cast %62 : vector<8x1xi1> to vector<8x1xi1>
      %64 = vector.broadcast %63 : vector<8x1xi1> to vector<8x128xi1>
      %65 = arith.select %64, %60, %52 : vector<8x128xi1>, vector<8x128xf32>
      %c4_i32 = arith.constant 4 : i32
      %66 = arith.addi %3, %c4_i32 : i32
      %67 = arith.index_cast %c4_i32 : i32 to index
      %c0_22 = arith.constant 0 : index
      %c0_23 = arith.constant 0 : index
      %68 = vector.load %arg3[%67, %c0_22, %c0_23] : memref<8x8x128xf32, #tpu.memory_space<vmem>>, vector<1x8x128xf32>
      %69 = vector.shape_cast %68 : vector<1x8x128xf32> to vector<8x128xf32>
      %70 = arith.truncf %65 : vector<8x128xf32> to vector<8x128xbf16>
      %cst_24 = arith.constant dense<0.000000e+00> : vector<8x128xf32>
      %71 = tpu.matmul %70, %12, %cst_24 {dimension_numbers = #tpu.dot_dimension_numbers<[1], [0], [0], [1], [0, 0, 1, 1], [], []>} : vector<8x128xbf16>, vector<128x128xbf16>, vector<8x128xf32> -> vector<8x128xf32>
      %72 = arith.addf %69, %71 : vector<8x128xf32>
      %73 = math.tanh %72 : vector<8x128xf32>
      %74 = vector.broadcast %66 : i32 to vector<8x1xi32>
      %75 = arith.cmpi slt, %74, %11 : vector<8x1xi32>
      %76 = vector.shape_cast %75 : vector<8x1xi1> to vector<8x1xi1>
      %77 = vector.broadcast %76 : vector<8x1xi1> to vector<8x128xi1>
      %78 = arith.select %77, %73, %65 : vector<8x128xi1>, vector<8x128xf32>
      %c5_i32 = arith.constant 5 : i32
      %79 = arith.addi %3, %c5_i32 : i32
      %80 = arith.index_cast %c5_i32 : i32 to index
      %c0_25 = arith.constant 0 : index
      %c0_26 = arith.constant 0 : index
      %81 = vector.load %arg3[%80, %c0_25, %c0_26] : memref<8x8x128xf32, #tpu.memory_space<vmem>>, vector<1x8x128xf32>
      %82 = vector.shape_cast %81 : vector<1x8x128xf32> to vector<8x128xf32>
      %83 = arith.truncf %78 : vector<8x128xf32> to vector<8x128xbf16>
      %cst_27 = arith.constant dense<0.000000e+00> : vector<8x128xf32>
      %84 = tpu.matmul %83, %12, %cst_27 {dimension_numbers = #tpu.dot_dimension_numbers<[1], [0], [0], [1], [0, 0, 1, 1], [], []>} : vector<8x128xbf16>, vector<128x128xbf16>, vector<8x128xf32> -> vector<8x128xf32>
      %85 = arith.addf %82, %84 : vector<8x128xf32>
      %86 = math.tanh %85 : vector<8x128xf32>
      %87 = vector.broadcast %79 : i32 to vector<8x1xi32>
      %88 = arith.cmpi slt, %87, %11 : vector<8x1xi32>
      %89 = vector.shape_cast %88 : vector<8x1xi1> to vector<8x1xi1>
      %90 = vector.broadcast %89 : vector<8x1xi1> to vector<8x128xi1>
      %91 = arith.select %90, %86, %78 : vector<8x128xi1>, vector<8x128xf32>
      %c6_i32 = arith.constant 6 : i32
      %92 = arith.addi %3, %c6_i32 : i32
      %93 = arith.index_cast %c6_i32 : i32 to index
      %c0_28 = arith.constant 0 : index
      %c0_29 = arith.constant 0 : index
      %94 = vector.load %arg3[%93, %c0_28, %c0_29] : memref<8x8x128xf32, #tpu.memory_space<vmem>>, vector<1x8x128xf32>
      %95 = vector.shape_cast %94 : vector<1x8x128xf32> to vector<8x128xf32>
      %96 = arith.truncf %91 : vector<8x128xf32> to vector<8x128xbf16>
      %cst_30 = arith.constant dense<0.000000e+00> : vector<8x128xf32>
      %97 = tpu.matmul %96, %12, %cst_30 {dimension_numbers = #tpu.dot_dimension_numbers<[1], [0], [0], [1], [0, 0, 1, 1], [], []>} : vector<8x128xbf16>, vector<128x128xbf16>, vector<8x128xf32> -> vector<8x128xf32>
      %98 = arith.addf %95, %97 : vector<8x128xf32>
      %99 = math.tanh %98 : vector<8x128xf32>
      %100 = vector.broadcast %92 : i32 to vector<8x1xi32>
      %101 = arith.cmpi slt, %100, %11 : vector<8x1xi32>
      %102 = vector.shape_cast %101 : vector<8x1xi1> to vector<8x1xi1>
      %103 = vector.broadcast %102 : vector<8x1xi1> to vector<8x128xi1>
      %104 = arith.select %103, %99, %91 : vector<8x128xi1>, vector<8x128xf32>
      %c7_i32 = arith.constant 7 : i32
      %105 = arith.addi %3, %c7_i32 : i32
      %106 = arith.index_cast %c7_i32 : i32 to index
      %c0_31 = arith.constant 0 : index
      %c0_32 = arith.constant 0 : index
      %107 = vector.load %arg3[%106, %c0_31, %c0_32] : memref<8x8x128xf32, #tpu.memory_space<vmem>>, vector<1x8x128xf32>
      %108 = vector.shape_cast %107 : vector<1x8x128xf32> to vector<8x128xf32>
      %109 = arith.truncf %104 : vector<8x128xf32> to vector<8x128xbf16>
      %cst_33 = arith.constant dense<0.000000e+00> : vector<8x128xf32>
      %110 = tpu.matmul %109, %12, %cst_33 {dimension_numbers = #tpu.dot_dimension_numbers<[1], [0], [0], [1], [0, 0, 1, 1], [], []>} : vector<8x128xbf16>, vector<128x128xbf16>, vector<8x128xf32> -> vector<8x128xf32>
      %111 = arith.addf %108, %110 : vector<8x128xf32>
      %112 = math.tanh %111 : vector<8x128xf32>
      %113 = vector.broadcast %105 : i32 to vector<8x1xi32>
      %114 = arith.cmpi slt, %113, %11 : vector<8x1xi32>
      %115 = vector.shape_cast %114 : vector<8x1xi1> to vector<8x1xi1>
      %116 = vector.broadcast %115 : vector<8x1xi1> to vector<8x128xi1>
      %117 = arith.select %116, %112, %104 : vector<8x128xi1>, vector<8x128xf32>
      %c8_i32_34 = arith.constant 8 : i32
      %c0_35 = arith.constant 0 : index
      %c0_36 = arith.constant 0 : index
      %118 = vector.load %arg7[%c0_35, %c0_36] : memref<8x128xf32, #tpu.memory_space<vmem>>, vector<8x128xf32>
      tpu.vector_store %arg7[%c0_35, %c0_36], %117 {strides = array<i32>} : memref<8x128xf32, #tpu.memory_space<vmem>>, vector<8x128xf32>,
    } else {
    }
    %c0_i32_2 = arith.constant 0 : i32
    %8 = arith.cmpi eq, %arg1, %c0_i32_2 : i32
    %9 = arith.extui %8 : i1 to i32
    %c0_i32_3 = arith.constant 0 : i32
    %10 = arith.cmpi ne, %9, %c0_i32_3 : i32
    scf.if %10 {
      %c0_4 = arith.constant 0 : index
      %c0_5 = arith.constant 0 : index
      %11 = vector.load %arg7[%c0_4, %c0_5] : memref<8x128xf32, #tpu.memory_space<vmem>>, vector<8x128xf32>
      %c0_6 = arith.constant 0 : index
      %c0_7 = arith.constant 0 : index
      %12 = vector.load %arg6[%c0_6, %c0_7] : memref<8x128xf32, #tpu.memory_space<vmem>>, vector<8x128xf32>
      tpu.vector_store %arg6[%c0_6, %c0_7], %11 {strides = array<i32>} : memref<8x128xf32, #tpu.memory_space<vmem>>, vector<8x128xf32>,
    } else {
    }
    return
  }
  func.func @transform_0(%arg0: i32, %arg1: i32, %arg2: memref<2xi32, #tpu.memory_space<smem>>) -> (i32, i32, i32) {
    %c1 = arith.constant 1 : index
    %0 = memref.load %arg2[%c1] : memref<2xi32, #tpu.memory_space<smem>>
    %1 = arith.minsi %arg1, %0 : i32
    %c0_i32 = arith.constant 0 : i32
    %c0_i32_0 = arith.constant 0 : i32
    return %1, %arg0, %c0_i32 : i32, i32, i32
  }
  func.func @transform_1(%arg0: i32, %arg1: i32, %arg2: memref<2xi32, #tpu.memory_space<smem>>) -> (i32, i32) {
    %c0_i32 = arith.constant 0 : i32
    %c0_i32_0 = arith.constant 0 : i32
    return %arg0, %c0_i32 : i32, i32
  }
  func.func @transform_2(%arg0: i32, %arg1: i32, %arg2: memref<2xi32, #tpu.memory_space<smem>>) -> (i32, i32) {
    %c0_i32 = arith.constant 0 : i32
    %c0_i32_0 = arith.constant 0 : i32
    %c0_i32_1 = arith.constant 0 : i32
    return %c0_i32, %c0_i32_0 : i32, i32
  }
  func.func @transform_3(%arg0: i32, %arg1: i32, %arg2: memref<2xi32, #tpu.memory_space<smem>>) -> (i32, i32) {
    %c0_i32 = arith.constant 0 : i32
    %c0_i32_0 = arith.constant 0 : i32
    return %arg0, %c0_i32 : i32, i32
  }
}

</mosaic_0001>

<bundles_post_ra>
// kernel: tpu_custom_call.1
= control target key start
LH: loop header
LB: loop body
LE: loop exit
PB: predicated region body
PF: predicated region fallthrough
CT: control target
= control target key end

     0   :  { %s1230_s0 = inlined_call_operand.vmem [shape: s32[2], index: 0, kind: input, shape index: {}]   ;;  %s1231_s1 = inlined_call_operand.hbm [shape: f32[8,8,128], index: 1, kind: input, shape index: {}]   ;;  %s1232_s2 = inlined_call_operand.vmem [shape: s32[8,1], index: 2, kind: input, shape index: {}]   ;;  %s1233_s3 = inlined_call_operand.hbm [shape: bf16[128,128], index: 3, kind: input, shape index: {}]   ;;  %s1234_s4 = inlined_call_operand.hbm [shape: f32[8,128], index: 4, kind: output, shape index: {}]  }
   0x1   :  { %s9_s17 = sshll.u32 %s1230_s0, 4  ;;  %s10_s17 = int_to_ptr.vmem [resolvable:$true] %s9_s17 }
   0x2   :  { %s885_s18 = scalar_lea.vmem %s10_s17, 16  ;;  %p890_p1 = scmp.lt.s32.totalorder %s10_s17, %s10_s17 }
   0x3   :  { %p886_p0 = scmp.ne.s32.totalorder %s10_s17, %s885_s18  ;;  %p891_p2 = scmp.lt.s32.totalorder %s885_s18, %s885_s18 }
   0x5   :  { %p892_p3 = por %p891_p2, %p890_p1 }
   0x7   :  { %p893_p4 = pnand %p892_p3, %p886_p0 }
   0x9   :  { %896 = shalt.err (!%p893_p4)  }
   0xa   :  { %s973_s19 = smov [#allocation4]  }
   0xb   :  { %12 = dma.vmem_to_smem %s10_s17, 16, %s973_s19, [#allocation3] }
   0xc   :  { %965 = dma.done.wait [#allocation3], 16 }
   0xd   :  { %966 = vsyncadd [#allocation3], 4294967280 }
   0xe   :  { %14 = sfence }
   0xf   :  { %15 = vsyncpa [#allocation6], 0 }
  0x10   :  { %16 = vsyncpa [#allocation9], 0 }
  0x11   :  { %17 = vsyncpa [#allocation7], 0  ;;  %s592_s20 = sld [smem:[#allocation4 + $0x1]]  ;;  %s974_s21 = smov [#allocation8]  }
  0x12   :  { %s43_s22 = sshll.u32 %s974_s21, 4  ;;  %s975_s0 = smov [#allocation5]   ;;  %s44_s22 = int_to_ptr.vmem [resolvable:$true] %s43_s22 }
  0x13   :  { %s29_s23 = sshll.u32 %s975_s0, 4  ;;  %s897_s26 = scalar_lea.hbm %s1233_s3, 1024  ;;  %s30_s23 = int_to_ptr.vmem [resolvable:$true] %s29_s23 }
  0x14   :  { %p898_p6 = scmp.ne.s32.totalorder %s1233_s3, %s897_s26  ;;  %p901_p7 = scmp.lt.u32.totalorder %s897_s26, %s1233_s3 }
  0x16   :  { %p903_p8 = pnand %p901_p7, %p898_p6 }
  0x17   :  { %p593_p5 = scmp.gt.s32.totalorder %s592_s20, 0 }
  0x18   :  { %906 = shalt.err (!%p903_p8)
}
  0x19   :  { %s907_s5 = scalar_lea.vmem %s44_s22, 1024  ;;  %p912_p10 = scmp.lt.s32.totalorder %s44_s22, %s44_s22 }
  0x1a   :  { %p908_p9 = scmp.ne.s32.totalorder %s44_s22, %s907_s5  ;;  %p913_p11 = scmp.lt.s32.totalorder %s907_s5, %s907_s5 }
  0x1c   :  { %p914_p12 = por %p913_p11, %p912_p10 }
  0x1e   :  { %p915_p13 = pnand %p914_p12, %p908_p9 }
  0x20   :  { %918 = shalt.err (!%p915_p13)
}
  0x21   :  { %s976_s6 = smov 64   ;;  %s977_s7 = smov 4  }
  0x22   :  { %49 = dma.hbm_to_vmem [thread:$0]  %s1233_s3, 1024, %s44_s22, [#allocation9], %s976_s6, %s976_s6, %s977_s7  }
  0x23   :  { %s1236_s20 = smov (%p593_p5, %s592_s20), 0  ;;  %s921_s17 = scalar_lea.hbm %s1231_s1, 1024 }
  0x24   :  { %s614_s10 = sshll.u32 %s1236_s20, 10 }
  0x25   :  { %s28_s13 = scalar_lea.hbm %s1231_s1, %s614_s10 }
  0x26   :  { %s919_s14 = scalar_lea.hbm %s28_s13, 1024  ;;  %p922_p1 = scmp.lt.u32.totalorder %s28_s13, %s1231_s1 }
  0x27   :  { %p920_p0 = scmp.ne.s32.totalorder %s28_s13, %s919_s14  ;;  %p923_p2 = scmp.lt.u32.totalorder %s921_s17, %s919_s14 }
  0x28   :  { %p925_p4 = scmp.lt.u32.totalorder %s919_s14, %s28_s13 }
  0x29   :  { %p924_p3 = por %p923_p2, %p922_p1 }
  0x2b   :  { %p926_p5 = por %p925_p4, %p924_p3 }
  0x2d   :  { %p927_p6 = pnand %p926_p5, %p920_p0 }
  0x2f   :  { %930 = shalt.err (!%p927_p6)
}
  0x30   :  { %s931_s3 = scalar_lea.vmem %s30_s23, 1024  ;;  %p936_p8 = scmp.lt.s32.totalorder %s30_s23, %s30_s23 }
  0x31   :  { %p932_p7 = scmp.ne.s32.totalorder %s30_s23, %s931_s3  ;;  %p937_p9 = scmp.lt.s32.totalorder %s931_s3, %s931_s3 }
  0x33   :  { %p938_p10 = por %p937_p9, %p936_p8 }
  0x35   :  { %p939_p11 = pnand %p938_p10, %p932_p7 }
  0x37   :  { %942 = shalt.err (!%p939_p11)
}
  0x38   :  { %s978_s20 = smov 128   ;;  %s979_s21 = smov 8  }
  0x39   :  { %35 = dma.hbm_to_vmem [thread:$0]  %s28_s13, 1024, %s30_s23, [#allocation6], %s978_s20, %s978_s20, %s979_s21  }
  0x3a   :  { %967 = dma.done.wait [#allocation6], 1024  }
  0x3b   :  { %968 = vsyncadd [#allocation6], 4294966272 }
  0x3c   :  { %969 = dma.done.wait [#allocation9], 1024  }
  0x3d   :  { %970 = vsyncadd [#allocation9], 4294966272  ;;  %s67_s1 = sld [smem:[#allocation4]]  ;;  %v980_v0 = vmov 0.0  }
  0x3e   :  { %65 = vst [vmem:[#allocation2] sm:$0xff] %v980_v0 }
  0x43   :  { %p597_p12 = scmp.le.s32.totalorder %s67_s1, 0 }
  0x44   :  { %v1035_v1 = vld [vmem:[#allocation8] sm:$0xff] (!%p597_p12)   ;;  %v981_v2 = vmov (!%p597_p12), 0.0   ;;  %v1040_v3 = vld [vmem:[#allocation8 + $0x8] sm:$0xff] (!%p597_p12)   ;;  %vm982_vm0 = vmmov (!%p597_p12), 0   ;;  %v983_v4 = vmov (!%p597_p12), 0   ;;  %v1052_v5 = vld [vmem:[#allocation8 + $0x10] sm:$0xff] (!%p597_p12)  }
  0x45   :  { %71 = sbr.rel (%p597_p12) target bundleno = 1924 (0x784), region = 29  ;;  %687 = vmatprep.subr.bf16.mxu0 (!%p597_p12), %v981_v2  ;;  %707 = vmatprep.subr.bf16.mxu1 (!%p597_p12), %v981_v2  ;;  %v1058_v6 = vld [vmem:[%s1232_s2] sm:$0xff] (!%p597_p12)  ;;  %v1074_v10 = vld [vmem:[#allocation8 + $0x20] sm:$0xff] (!%p597_p12)   ;;  %v1082_v12 = vld [vmem:[#allocation8 + $0x28] sm:$0xff] (!%p597_p12)  }
  0x46   :  { %688 = vmatpush3.bf16.msra.mxu0 (!%p597_p12), %v1035_v1  ;;  %703 = vmatprep.mubr.msk.bf16.mxu0 (!%p597_p12), %vm982_vm0, %v981_v2  ;;  %vm606_vm1 = vcmp.gt.s32.totalorder (!%p597_p12), %v1058_v6, 0  ;;  %vm607_vm2 = vcmp.gt.s32.totalorder (!%p597_p12), %v1058_v6, 1  ;;  %v1065_v7 = vld [vmem:[#allocation8 + $0x18] sm:$0xff] (!%p597_p12)   ;;  %vm610_vm3 = vcmp.gt.s32.totalorder (!%p597_p12), %v1058_v6, 4  ;;  %vm612_vm4 = vcmp.gt.s32.totalorder (!%p597_p12), %v1058_v6, 6  ;;  %v1089_v14 = vld [vmem:[#allocation8 + $0x30] sm:$0xff] (!%p597_p12)  }
  0x47   :  { %689 = vmatprep.subr.bf16.mxu0 (!%p597_p12), %v981_v2  ;;  %859 = vset.pattern.permute.xlu0 (!%p597_p12), %v983_v4  ;;  %v184_v8 = vsel (!%p597_p12), %vm606_vm1, 1, %v983_v4  ;;  %v238_v9 = vsel (!%p597_p12), %vm607_vm2, 1, %v983_v4  ;;  %v400_v11 = vsel (!%p597_p12), %vm610_vm3, 1, %v983_v4  ;;  %v508_v13 = vsel (!%p597_p12), %vm612_vm4, 1, %v983_v4  ;;  %v1095_v15 = vld [vmem:[#allocation8 + $0x38] sm:$0xff] (!%p597_p12)   ;;  %v90_v18 = vld [vmem:[#allocation5] sm:$0xff] (!%p597_p12) }
  0x48   :  { %708 = vmatpush3.bf16.msra.mxu1 (!%p597_p12), %v1035_v1  ;;  %723 = vmatprep.mubr.msk.bf16.mxu1 (!%p597_p12), %vm982_vm0, %v981_v2  ;;  %v89_v16 = vld [vmem:[#allocation2] sm:$0xff] (!%p597_p12)  ;;  %vm608_vm6 = vcmp.gt.s32.totalorder (!%p597_p12), %v1058_v6, 2  ;;  %vm609_vm7 = vcmp.gt.s32.totalorder (!%p597_p12), %v1058_v6, 3  ;;  %vm611_vm8 = vcmp.gt.s32.totalorder (!%p597_p12), %v1058_v6, 5  ;;  %vm613_vm9 = vcmp.gt.s32.totalorder (!%p597_p12), %v1058_v6, 7  ;;  %v192_v32 = vld [vmem:[#allocation5 + $0x8] sm:$0xff] (!%p597_p12) }
  0x49   :  { %709 = vmatprep.subr.bf16.mxu1 (!%p597_p12), %v981_v2  ;;  %860 = vset.pattern.permute.xlu1 (!%p597_p12), %v983_v4  ;;  %v91_v17 = vpack.c.bf16 (!%p597_p12), %v89_v16, %v89_v16  ;;  %v292_v28 = vsel (!%p597_p12), %vm608_vm6, 1, %v983_v4  ;;  %v346_v29 = vsel (!%p597_p12), %vm609_vm7, 1, %v983_v4  ;;  %v454_v30 = vsel (!%p597_p12), %vm611_vm8, 1, %v983_v4  ;;  %v246_v42 = vld [vmem:[#allocation5 + $0x10] sm:$0xff] (!%p597_p12)  ;;  %v300_v52 = vld [vmem:[#allocation5 + $0x18] sm:$0xff] (!%p597_p12)  ;;  %v354_v62 = vld [vmem:[#allocation5 + $0x20] sm:$0xff] (!%p597_p12) }
  0x4a   :  { %690 = vmatpush3.bf16.msra.mxu0 (!%p597_p12), %v1040_v3  ;;  %186 = vperm.xlu0 (!%p597_p12), %859, %v184_v8   ;;  %v562_v31 = vsel (!%p597_p12), %vm613_vm9, 1, %v983_v4 }
  0x4b   :  { %691 = vmatprep.subr.bf16.mxu0 (!%p597_p12), %v981_v2  ;;  %294 = vperm.xlu1 (!%p597_p12), %860, %v292_v28   ;;  %v516_v28 = vld [vmem:[#allocation5 + $0x38] sm:$0xff] (!%p597_p12) }
  0x4c   :  { %710 = vmatpush3.bf16.msra.mxu1 %v1040_v3 }
  0x4d   :  { %711 = vmatprep.subr.bf16.mxu1 %v981_v2 }
  0x4e   :  { %692 = vmatpush3.bf16.msra.mxu0 %v1052_v5  ;;  %240 = vperm.xlu0 %859, %v238_v9  }
  0x4f   :  { %693 = vmatprep.subr.bf16.mxu0 %v981_v2  ;;  %348 = vperm.xlu1 %860, %v346_v29  }
  0x50   :  { %712 = vmatpush3.bf16.msra.mxu1 %v1052_v5 }
  0x51   :  { %713 = vmatprep.subr.bf16.mxu1 %v981_v2 }
  0x52   :  { %694 = vmatpush3.bf16.msra.mxu0 %v1065_v7  ;;  %402 = vperm.xlu0 %859, %v400_v11  }
  0x53   :  { %695 = vmatprep.subr.bf16.mxu0 %v981_v2  ;;  %456 = vperm.xlu1 %860, %v454_v30  }
  0x54   :  { %714 = vmatpush3.bf16.msra.mxu1 %v1065_v7 }
  0x55   :  { %715 = vmatprep.subr.bf16.mxu1 %v981_v2 }
  0x56   :  { %696 = vmatpush3.bf16.msra.mxu0 %v1074_v10  ;;  %510 = vperm.xlu0 %859, %v508_v13  }
  0x57   :  { %697 = vmatprep.subr.bf16.mxu0 %v981_v2  ;;  %564 = vperm.xlu1 %860, %v562_v31  }
  0x58   :  { %716 = vmatpush3.bf16.msra.mxu1 %v1074_v10 }
  0x59   :  { %717 = vmatprep.subr.bf16.mxu1 %v981_v2 }
  0x5a   :  { %698 = vmatpush3.bf16.msra.mxu0 %v1082_v12 }
  0x5b   :  { %699 = vmatprep.subr.bf16.mxu0 %v981_v2 }
  0x5c   :  { %718 = vmatpush3.bf16.msra.mxu1 %v1082_v12 }
  0x5d   :  { %719 = vmatprep.subr.bf16.mxu1 %v981_v2 }
  0x5e   :  { %700 = vmatpush3.bf16.msra.mxu0 %v1089_v14 }
  0x5f   :  { %701 = vmatprep.subr.bf16.mxu0 %v981_v2 }
  0x60   :  { %720 = vmatpush3.bf16.msra.mxu1 %v1089_v14 }
  0x61   :  { %721 = vmatprep.subr.bf16.mxu1 %v981_v2 }
  0x62   :  { %702 = vmatpush3.bf16.msra.mxu0 %v1095_v15 }
  0x63   :  { %727 = vmatprep.subr.bf16.mxu0 %v981_v2 }
  0x64   :  { %722 = vmatpush3.bf16.msra.mxu1 %v1095_v15 }
  0x65   :  { %704 = vmatmul.mubr.bf16.vlgmr.msra.gmra.mrb[0].mxu0 %v91_v17  ;;  %747 = vmatprep.subr.bf16.mxu1 %v981_v2 }
  0x66   :  { %728 = vmatpush3.bf16.msra.mxu0 %v1035_v1  ;;  %743 = vmatprep.mubr.msk.bf16.mxu0 %vm982_vm0, %v981_v2 }
  0x67   :  { %729 = vmatprep.subr.bf16.mxu0 %v981_v2 }
  0x6a   :  { %730 = vmatpush3.bf16.msra.mxu0 %v1040_v3 }
  0x6b   :  { %731 = vmatprep.subr.bf16.mxu0 %v981_v2 }
  0x6e   :  { %732 = vmatpush3.bf16.msra.mxu0 %v1052_v5 }
  0x6f   :  { %733 = vmatprep.subr.bf16.mxu0 %v981_v2 }
  0x72   :  { %734 = vmatpush3.bf16.msra.mxu0 %v1065_v7 }
  0x73   :  { %735 = vmatprep.subr.bf16.mxu0 %v981_v2 }
  0x76   :  { %736 = vmatpush3.bf16.msra.mxu0 %v1074_v10 }
  0x77   :  { %737 = vmatprep.subr.bf16.mxu0 %v981_v2 }
  0x7a   :  { %738 = vmatpush3.bf16.msra.mxu0 %v1082_v12 }
  0x7b   :  { %739 = vmatprep.subr.bf16.mxu0 %v981_v2 }
  0x7e   :  { %740 = vmatpush3.bf16.msra.mxu0 %v1089_v14 }
  0x7f   :  { %741 = vmatprep.subr.bf16.mxu0 %v981_v2 }
  0x82   :  { %742 = vmatpush3.bf16.msra.mxu0 %v1095_v15 }
  0x83   :  { %767 = vmatprep.subr.bf16.mxu0 %v981_v2 }
  0xc9   :  { %v187_v24 = vpop.permute.xlu0 %186 }
  0xca   :  { %vm188_vm5 = vcmp.eq.s32.totalorder %v187_v24, 1  ;;  %v295_v48 = vpop.permute.xlu1 %294 }
  0xcb   :  { %vm296_vm11 = vcmp.eq.s32.totalorder %v295_v48, 1 }
  0xcd   :  { %v241_v38 = vpop.permute.xlu0 %240 }
  0xce   :  { %vm242_vm10 = vcmp.eq.s32.totalorder %v241_v38, 1  ;;  %v349_v58 = vpop.permute.xlu1 %348 }
  0xcf   :  { %vm350_vm12 = vcmp.eq.s32.totalorder %v349_v58, 1 }
  0xd1   :  { %v403_v9 = vpop.permute.xlu0 %402 }
  0xd2   :  { %vm404_vm13 = vcmp.eq.s32.totalorder %v403_v9, 1 }
  0xd5   :  { %v511_v24 = vpop.permute.xlu0 %510 }
  0xd6   :  { %vm512_vm15 = vcmp.eq.s32.totalorder %v511_v24, 1 }
 0x138   :  { %v174_v19 = vpop.f32.mrb[0].mxu0 }
 0x139   :  { %v180_v20 = vadd.f32 %v174_v19, %v90_v18  ;;  %v705_v21 = vpop.f32.mrb[1].mxu0 }
 0x13a   :  { %v177_v22 = vpop.f32.mrb[2].mxu0  ;;  %v462_v21 = vld [vmem:[#allocation5 + $0x30] sm:$0xff] }
 0x13b   :  { %869 = vtanh.f32 %v180_v20  ;;  %v706_v23 = vpop.f32.mrb[3].mxu0 }
 0x145   :  { %v870_v25 = vpop.eup %869 }
 0x146   :  { %v189_v26 = vsel %vm188_vm5, %v870_v25, %v89_v16 }
 0x147   :  { %v193_v27 = vpack.c.bf16 %v189_v26, %v189_v26 }
 0x149   :  { %724 = vmatmul.mubr.bf16.vlgmr.msra.gmra.mrb[0].mxu1 %v193_v27 }
 0x14a   :  { %748 = vmatpush3.bf16.msra.mxu1 %v1035_v1  ;;  %763 = vmatprep.mubr.msk.bf16.mxu1 %vm982_vm0, %v981_v2 }
 0x14b   :  { %749 = vmatprep.subr.bf16.mxu1 %v981_v2 }
 0x14e   :  { %750 = vmatpush3.bf16.msra.mxu1 %v1040_v3 }
 0x14f   :  { %751 = vmatprep.subr.bf16.mxu1 %v981_v2 }
 0x152   :  { %752 = vmatpush3.bf16.msra.mxu1 %v1052_v5 }
 0x153   :  { %753 = vmatprep.subr.bf16.mxu1 %v981_v2 }
 0x156   :  { %754 = vmatpush3.bf16.msra.mxu1 %v1065_v7 }
 0x157   :  { %755 = vmatprep.subr.bf16.mxu1 %v981_v2 }
 0x15a   :  { %756 = vmatpush3.bf16.msra.mxu1 %v1074_v10 }
 0x15b   :  { %757 = vmatprep.subr.bf16.mxu1 %v981_v2 }
 0x15e   :  { %758 = vmatpush3.bf16.msra.mxu1 %v1082_v12 }
 0x15f   :  { %759 = vmatprep.subr.bf16.mxu1 %v981_v2 }
 0x162   :  { %760 = vmatpush3.bf16.msra.mxu1 %v1089_v14 }
 0x163   :  { %761 = vmatprep.subr.bf16.mxu1 %v981_v2 }
 0x166   :  { %762 = vmatpush3.bf16.msra.mxu1 %v1095_v15 }
 0x167   :  { %787 = vmatprep.subr.bf16.mxu1 %v981_v2 }
 0x21c   :  { %v228_v33 = vpop.f32.mrb[0].mxu1 }
 0x21d   :  { %v234_v34 = vadd.f32 %v228_v33, %v192_v32  ;;  %v725_v35 = vpop.f32.mrb[1].mxu1 }
 0x21e   :  { %v231_v36 = vpop.f32.mrb[2].mxu1 }
 0x21f   :  { %871 = vtanh.f32 %v234_v34  ;;  %v726_v37 = vpop.f32.mrb[3].mxu1 }
 0x229   :  { %v872_v39 = vpop.eup %871 }
 0x22a   :  { %v243_v40 = vsel %vm242_vm10, %v872_v39, %v189_v26 }
 0x22b   :  { %v247_v41 = vpack.c.bf16 %v243_v40, %v243_v40 }
 0x22d   :  { %744 = vmatmul.mubr.bf16.vlgmr.msra.gmra.mrb[4].mxu0 %v247_v41 }
 0x22e   :  { %768 = vmatpush3.bf16.msra.mxu0 %v1035_v1  ;;  %783 = vmatprep.mubr.msk.bf16.mxu0 %vm982_vm0, %v981_v2 }
 0x22f   :  { %769 = vmatprep.subr.bf16.mxu0 %v981_v2 }
 0x232   :  { %770 = vmatpush3.bf16.msra.mxu0 %v1040_v3 }
 0x233   :  { %771 = vmatprep.subr.bf16.mxu0 %v981_v2 }
 0x236   :  { %772 = vmatpush3.bf16.msra.mxu0 %v1052_v5 }
 0x237   :  { %773 = vmatprep.subr.bf16.mxu0 %v981_v2 }
 0x23a   :  { %774 = vmatpush3.bf16.msra.mxu0 %v1065_v7 }
 0x23b   :  { %775 = vmatprep.subr.bf16.mxu0 %v981_v2 }
 0x23e   :  { %776 = vmatpush3.bf16.msra.mxu0 %v1074_v10 }
 0x23f   :  { %777 = vmatprep.subr.bf16.mxu0 %v981_v2 }
 0x242   :  { %778 = vmatpush3.bf16.msra.mxu0 %v1082_v12 }
 0x243   :  { %779 = vmatprep.subr.bf16.mxu0 %v981_v2 }
 0x246   :  { %780 = vmatpush3.bf16.msra.mxu0 %v1089_v14 }
 0x247   :  { %781 = vmatprep.subr.bf16.mxu0 %v981_v2 }
 0x24a   :  { %782 = vmatpush3.bf16.msra.mxu0 %v1095_v15 }
 0x24b   :  { %807 = vmatprep.subr.bf16.mxu0 %v981_v2 }
 0x300   :  { %v282_v43 = vpop.f32.mrb[4].mxu0 }
 0x301   :  { %v288_v44 = vadd.f32 %v282_v43, %v246_v42  ;;  %v745_v45 = vpop.f32.mrb[5].mxu0 }
 0x302   :  { %v285_v46 = vpop.f32.mrb[6].mxu0 }
 0x303   :  { %873 = vtanh.f32 %v288_v44  ;;  %v746_v47 = vpop.f32.mrb[7].mxu0 }
 0x30d   :  { %v874_v49 = vpop.eup %873 }
 0x30e   :  { %v297_v50 = vsel %vm296_vm11, %v874_v49, %v243_v40 }
 0x30f   :  { %v301_v51 = vpack.c.bf16 %v297_v50, %v297_v50 }
 0x311   :  { %764 = vmatmul.mubr.bf16.vlgmr.msra.gmra.mrb[4].mxu1 %v301_v51 }
 0x312   :  { %788 = vmatpush3.bf16.msra.mxu1 %v1035_v1  ;;  %803 = vmatprep.mubr.msk.bf16.mxu1 %vm982_vm0, %v981_v2 }
 0x313   :  { %789 = vmatprep.subr.bf16.mxu1 %v981_v2 }
 0x316   :  { %790 = vmatpush3.bf16.msra.mxu1 %v1040_v3 }
 0x317   :  { %791 = vmatprep.subr.bf16.mxu1 %v981_v2 }
 0x31a   :  { %792 = vmatpush3.bf16.msra.mxu1 %v1052_v5 }
 0x31b   :  { %793 = vmatprep.subr.bf16.mxu1 %v981_v2 }
 0x31e   :  { %794 = vmatpush3.bf16.msra.mxu1 %v1065_v7 }
 0x31f   :  { %795 = vmatprep.subr.bf16.mxu1 %v981_v2 }
 0x322   :  { %796 = vmatpush3.bf16.msra.mxu1 %v1074_v10 }
 0x323   :  { %797 = vmatprep.subr.bf16.mxu1 %v981_v2 }
 0x326   :  { %798 = vmatpush3.bf16.msra.mxu1 %v1082_v12 }
 0x327   :  { %799 = vmatprep.subr.bf16.mxu1 %v981_v2 }
 0x32a   :  { %800 = vmatpush3.bf16.msra.mxu1 %v1089_v14 }
 0x32b   :  { %801 = vmatprep.subr.bf16.mxu1 %v981_v2 }
 0x32e   :  { %802 = vmatpush3.bf16.msra.mxu1 %v1095_v15 }
 0x32f   :  { %827 = vmatprep.subr.bf16.mxu1 %v981_v2 }
 0x3e4   :  { %v336_v53 = vpop.f32.mrb[4].mxu1 }
 0x3e5   :  { %v342_v54 = vadd.f32 %v336_v53, %v300_v52  ;;  %v765_v55 = vpop.f32.mrb[5].mxu1 }
 0x3e6   :  { %v339_v56 = vpop.f32.mrb[6].mxu1 }
 0x3e7   :  { %875 = vtanh.f32 %v342_v54  ;;  %v766_v57 = vpop.f32.mrb[7].mxu1 }
 0x3f1   :  { %v876_v59 = vpop.eup %875 }
 0x3f2   :  { %v351_v60 = vsel %vm350_vm12, %v876_v59, %v297_v50 }
 0x3f3   :  { %v355_v61 = vpack.c.bf16 %v351_v60, %v351_v60 }
 0x3f5   :  { %784 = vmatmul.mubr.bf16.vlgmr.msra.gmra.mrb[8].mxu0 %v355_v61 }
 0x3f6   :  { %808 = vmatpush3.bf16.msra.mxu0 %v1035_v1  ;;  %823 = vmatprep.mubr.msk.bf16.mxu0 %vm982_vm0, %v981_v2 }
 0x3f7   :  { %809 = vmatprep.subr.bf16.mxu0 %v981_v2 }
 0x3fa   :  { %810 = vmatpush3.bf16.msra.mxu0 %v1040_v3 }
 0x3fb   :  { %811 = vmatprep.subr.bf16.mxu0 %v981_v2 }
 0x3fe   :  { %812 = vmatpush3.bf16.msra.mxu0 %v1052_v5 }
 0x3ff   :  { %813 = vmatprep.subr.bf16.mxu0 %v981_v2 }
 0x402   :  { %814 = vmatpush3.bf16.msra.mxu0 %v1065_v7 }
 0x403   :  { %815 = vmatprep.subr.bf16.mxu0 %v981_v2 }
 0x406   :  { %816 = vmatpush3.bf16.msra.mxu0 %v1074_v10 }
 0x407   :  { %817 = vmatprep.subr.bf16.mxu0 %v981_v2 }
 0x40a   :  { %818 = vmatpush3.bf16.msra.mxu0 %v1082_v12 }
 0x40b   :  { %819 = vmatprep.subr.bf16.mxu0 %v981_v2 }
 0x40e   :  { %820 = vmatpush3.bf16.msra.mxu0 %v1089_v14 }
 0x40f   :  { %821 = vmatprep.subr.bf16.mxu0 %v981_v2 }
 0x412   :  { %822 = vmatpush3.bf16.msra.mxu0 %v1095_v15 }
 0x4c8   :  { %v390_v63 = vpop.f32.mrb[8].mxu0 }
 0x4c9   :  { %v396_v0 = vadd.f32 %v390_v63, %v354_v62  ;;  %v785_v4 = vpop.f32.mrb[9].mxu0 }
 0x4ca   :  { %v393_v6 = vpop.f32.mrb[10].mxu0 }
 0x4cb   :  { %877 = vtanh.f32 %v396_v0  ;;  %v786_v8 = vpop.f32.mrb[11].mxu0 }
 0x4d5   :  { %v878_v11 = vpop.eup %877 }
 0x4d6   :  { %v405_v13 = vsel %vm404_vm13, %v878_v11, %v351_v60 }
 0x4d7   :  { %v409_v16 = vpack.c.bf16 %v405_v13, %v405_v13 }
 0x4d9   :  { %804 = vmatmul.mubr.bf16.vlgmr.msra.gmra.mrb[8].mxu1 %v409_v16 }
 0x4da   :  { %828 = vmatpush3.bf16.msra.mxu1 %v1035_v1  ;;  %843 = vmatprep.mubr.msk.bf16.mxu1 %vm982_vm0, %v981_v2  ;;  %v408_v1 = vld [vmem:[#allocation5 + $0x28] sm:$0xff] }
 0x4db   :  { %829 = vmatprep.subr.bf16.mxu1 %v981_v2 }
 0x4de   :  { %830 = vmatpush3.bf16.msra.mxu1 %v1040_v3 }
 0x4df   :  { %831 = vmatprep.subr.bf16.mxu1 %v981_v2 }
 0x4e2   :  { %832 = vmatpush3.bf16.msra.mxu1 %v1052_v5 }
 0x4e3   :  { %833 = vmatprep.subr.bf16.mxu1 %v981_v2 }
 0x4e6   :  { %834 = vmatpush3.bf16.msra.mxu1 %v1065_v7 }
 0x4e7   :  { %835 = vmatprep.subr.bf16.mxu1 %v981_v2 }
 0x4ea   :  { %836 = vmatpush3.bf16.msra.mxu1 %v1074_v10  ;;  %v457_v10 = vpop.permute.xlu1 %456 }
 0x4eb   :  { %837 = vmatprep.subr.bf16.mxu1 %v981_v2  ;;  %vm458_vm14 = vcmp.eq.s32.totalorder %v457_v10, 1 }
 0x4ee   :  { %838 = vmatpush3.bf16.msra.mxu1 %v1082_v12  ;;  %v565_v34 = vpop.permute.xlu1 %564 }
 0x4ef   :  { %839 = vmatprep.subr.bf16.mxu1 %v981_v2  ;;  %vm566_vm0 = vcmp.eq.s32.totalorder %v565_v34, 1 }
 0x4f2   :  { %840 = vmatpush3.bf16.msra.mxu1 %v1089_v14 }
 0x4f3   :  { %841 = vmatprep.subr.bf16.mxu1 %v981_v2 }
 0x4f6   :  { %842 = vmatpush3.bf16.msra.mxu1 %v1095_v15 }
 0x5ac   :  { %v444_v3 = vpop.f32.mrb[8].mxu1 }
 0x5ad   :  { %v450_v5 = vadd.f32 %v444_v3, %v408_v1  ;;  %v805_v7 = vpop.f32.mrb[9].mxu1 }
 0x5ae   :  { %v447_v17 = vpop.f32.mrb[10].mxu1 }
 0x5af   :  { %879 = vtanh.f32 %v450_v5  ;;  %v806_v18 = vpop.f32.mrb[11].mxu1 }
 0x5b9   :  { %v880_v19 = vpop.eup %879 }
 0x5ba   :  { %v459_v20 = vsel %vm458_vm14, %v880_v19, %v405_v13 }
 0x5bb   :  { %v463_v12 = vpack.c.bf16 %v459_v20, %v459_v20 }
 0x5bd   :  { %824 = vmatmul.mubr.bf16.vlgmr.msra.gmra.mrb[12].mxu0 %v463_v12 }
 0x690   :  { %v498_v22 = vpop.f32.mrb[12].mxu0 }
 0x691   :  { %v504_v14 = vadd.f32 %v498_v22, %v462_v21  ;;  %v825_v23 = vpop.f32.mrb[13].mxu0 }
 0x692   :  { %v501_v2 = vpop.f32.mrb[14].mxu0 }
 0x693   :  { %881 = vtanh.f32 %v504_v14  ;;  %v826_v15 = vpop.f32.mrb[15].mxu0 }
 0x69d   :  { %v882_v25 = vpop.eup %881 }
 0x69e   :  { %v513_v26 = vsel %vm512_vm15, %v882_v25, %v459_v20 }
 0x69f   :  { %v517_v27 = vpack.c.bf16 %v513_v26, %v513_v26 }
 0x6a1   :  { %844 = vmatmul.mubr.bf16.vlgmr.msra.gmra.mrb[12].mxu1 %v517_v27 }
 0x774   :  { %v552_v29 = vpop.f32.mrb[12].mxu1 }
 0x775   :  { %v558_v30 = vadd.f32 %v552_v29, %v516_v28  ;;  %v845_v31 = vpop.f32.mrb[13].mxu1 }
 0x776   :  { %v555_v32 = vpop.f32.mrb[14].mxu1 }
 0x777   :  { %883 = vtanh.f32 %v558_v30  ;;  %v846_v33 = vpop.f32.mrb[15].mxu1 }
 0x781   :  { %v884_v35 = vpop.eup %883 }
 0x782   :  { %v567_v36 = vsel %vm566_vm0, %v884_v35, %v513_v26 }
 0x783   :  { %568 = vst [vmem:[#allocation2] sm:$0xff] %v567_v36 }
 0x784 PF:  { %s984_s2 = smov [#allocation10]  }
 0x785   :  { %s580_s23 = sshll.u32 %s984_s2, 4  ;;  %s581_s23 = int_to_ptr.vmem [resolvable:$true] %s580_s23 }
 0x786   :  { %s943_s24 = scalar_lea.vmem %s581_s23, 128  ;;  %p948_p0 = scmp.lt.s32.totalorder %s581_s23, %s581_s23 }
 0x787   :  { %p944_p13 = scmp.ne.s32.totalorder %s581_s23, %s943_s24  ;;  %p949_p1 = scmp.lt.s32.totalorder %s943_s24, %s943_s24 }
 0x789   :  { %p950_p2 = por %p949_p1, %p948_p0 }
 0x78a   :  { %v572_v37 = vld [vmem:[#allocation2] sm:$0xff] }
 0x78b   :  { %573 = vst [vmem:[#allocation10] sm:$0xff] %v572_v37  ;;  %p951_p3 = pnand %p950_p2, %p944_p13 }
 0x78d   :  { %954 = shalt.err (!%p951_p3)
}
 0x78e   :  { %s955_s27 = scalar_lea.hbm %s1234_s4, 128 }
 0x78f   :  { %p956_p4 = scmp.ne.s32.totalorder %s1234_s4, %s955_s27  ;;  %p959_p5 = scmp.lt.u32.totalorder %s955_s27, %s1234_s4 }
 0x791   :  { %p961_p6 = pnand %p959_p5, %p956_p4 }
 0x793   :  { %964 = shalt.err (!%p961_p6)
}
 0x794   :  { %583 = dma.vmem_to_hbm [thread:$0]  %s581_s23, 128, %s1234_s4, [#allocation7]  }
 0x795   :  { %971 = dma.done.wait [#allocation7], 128  }
 0x796   :  { %972 = vsyncadd [#allocation7], 4294967168 }
 0x797   :  { %587 = vsyncpa [#allocation6], 1 }
 0x798   :  { %588 = vsyncpa [#allocation9], 1 }
 0x799   :  { %589 = vsyncpa [#allocation7], 1 }

</bundles_post_ra>
